<compile_context>
chip_gen: v7x
topology: tpu7x:2x2x1
jax: 0.10.0
libtpu: 0.0.40
codegen_flags: <defaults>
</compile_context>

<pallas_src>
import functools

import jax
import jax.numpy as jnp
from jax.experimental import pallas as pl
from jax.experimental.pallas import tpu as pltpu

EPS = 1e-5
NEG_SLOPE = 0.1
FEAT_TILE = 128          # lane-dense feature block; shards across v7x's 2 TensorCores


def _round_up(v, m):
    return (v + m - 1) // m * m


def _vmem_limit_bytes():
    cap = 128 * 1024 * 1024
    try:
        cap = int(pltpu.get_tpu_info().vmem_capacity_bytes)
    except Exception:
        pass
    # ~75% of physical VMEM, capped at 100 MiB: ~48 MiB on v7x (64 MiB physical),
    # ~96-100 MiB on v5e/v6e (128 MiB physical).
    return int(min(cap * 3 // 4, 100 * 1024 * 1024))


def _auto_row_tile(c_in, cf, vmem_budget):
    # Per-row VMEM: double-buffered bf16 agg+x blocks, double-buffered f32 out block,
    # plus in-flight f32 h / y temporaries.
    per_row = 2 * (2 * c_in * 2) + 2 * (cf * 4) + 2 * (cf * 4)
    # Double-buffered weights + gamma/beta + scratch + slack.
    fixed = 2 * (2 * c_in * cf * 2) + 8 * cf * 4 + (2 << 20)
    tm = (vmem_budget - fixed) // per_row
    return int(max(512, min(tm, 4096)))


def _gcbn_kernel(agg_ref, x_ref, wr_ref, wo_ref, gamma_ref, beta_ref, o_ref,
                 sum_ref, sumsq_ref, c_ref, scale_ref, shift_ref, *, n_nodes):
    # Grid: (feature_tile [parallel], phase [arbitrary], row_tile [arbitrary]).
    phase = pl.program_id(1)   # 0: accumulate BN stats   1: normalize + write
    tile = pl.program_id(2)    # row-tile index (innermost)

    # Fused GraphConv matmuls on the MXU: bf16 inputs, f32 accumulation.
    h = (jnp.dot(agg_ref[...], wr_ref[...], preferred_element_type=jnp.float32)
         + jnp.dot(x_ref[...], wo_ref[...], preferred_element_type=jnp.float32))
    tm = h.shape[0]

    @pl.when(jnp.logical_and(phase == 0, tile == 0))
    def _init():
        sum_ref[...] = jnp.zeros_like(sum_ref)
        sumsq_ref[...] = jnp.zeros_like(sumsq_ref)
        # Shift reference (~= per-feature mean) for numerically stable single-pass variance.
        c_ref[...] = jnp.sum(h, axis=0, keepdims=True) * (1.0 / tm)

    @pl.when(phase == 0)
    def _accumulate():
        # Mask rows past the true node count so padding never pollutes the statistics.
        rows = jax.lax.broadcasted_iota(jnp.int32, (tm, 1), 0) + tile * tm
        valid = (rows < n_nodes).astype(jnp.float32)
        hc = (h - c_ref[...]) * valid
        sum_ref[...] += jnp.sum(hc, axis=0, keepdims=True)
        sumsq_ref[...] += jnp.sum(hc * hc, axis=0, keepdims=True)

    @pl.when(jnp.logical_and(phase == 1, tile == 0))
    def _finalize_stats():
        inv_n = 1.0 / n_nodes                       # divide by the TRUE node count
        m1 = sum_ref[...] * inv_n                   # E[h - c]
        var = jnp.maximum(sumsq_ref[...] * inv_n - m1 * m1, 0.0)
        mean = c_ref[...] + m1
        scale = jax.lax.rsqrt(var + EPS) * gamma_ref[...]   # gamma folded into rsqrt
        scale_ref[...] = scale
        shift_ref[...] = beta_ref[...] - mean * scale

    @pl.when(phase == 1)
    def _normalize():
        y = h * scale_ref[...] + shift_ref[...]
        o_ref[...] = jnp.where(y >= 0, y, NEG_SLOPE * y)


def graph_conv_batch_norm(x, edge_index, w_rel, w_root, b_rel, gamma, beta,
                          *, row_tile=None):
    """x: [N, Cin] f32, edge_index: [2, E] int32 (row 0 = src, row 1 = dst).

    Weights are stored pre-transposed as [Cin, Cout].  row_tile=None -> auto-size
    against the device VMEM budget.
    """
    del b_rel  # per-feature constant bias cancels exactly under NodeLevelBatchNorm
    n, c_in = x.shape
    c_out = w_rel.shape[1]

    # --- Sparse neighbor sum-aggregation (no dense N x N adjacency). ---
    src = edge_index[0]
    dst = edge_index[1]
    agg = jax.ops.segment_sum(x[src], dst, num_segments=n)           # [N, Cin]

    # --- Tiling / padding. ---
    c_pad = _round_up(c_out, 128)                 # lane-dense, unmasked output stores
    cf = FEAT_TILE
    num_feat = c_pad // cf

    vmem_limit = _vmem_limit_bytes()
    if row_tile is None:
        row_tile = _auto_row_tile(c_in, cf, vmem_limit)
    tm = _round_up(max(16, min(int(row_tile), n)), 16)   # always a multiple of 16 (bf16 tile)
    n_pad = _round_up(n, tm)
    num_tiles = n_pad // tm

    # bf16 streamed operands (row-padded with zeros; feature-padded weights with zeros).
    agg_p = jnp.zeros((n_pad, c_in), jnp.bfloat16).at[:n].set(agg.astype(jnp.bfloat16))
    x_p = jnp.zeros((n_pad, c_in), jnp.bfloat16).at[:n].set(x.astype(jnp.bfloat16))
    w_rel_p = jnp.zeros((c_in, c_pad), jnp.bfloat16).at[:, :c_out].set(
        w_rel.astype(jnp.bfloat16))
    w_root_p = jnp.zeros((c_in, c_pad), jnp.bfloat16).at[:, :c_out].set(
        w_root.astype(jnp.bfloat16))
    gamma_p = jnp.zeros((1, c_pad), jnp.float32).at[:, :c_out].set(
        gamma.reshape(1, c_out).astype(jnp.float32))
    beta_p = jnp.zeros((1, c_pad), jnp.float32).at[:, :c_out].set(
        beta.reshape(1, c_out).astype(jnp.float32))

    kernel = functools.partial(_gcbn_kernel, n_nodes=n)

    # TODO(synk): running_mean/running_var EMA updates (track_running_stats) are host-side
    # module state; only training-mode batch statistics are computed here (so dropping b_rel
    # is exact for this forward pass).
    out_p = pl.pallas_call(
        kernel,
        out_shape=jax.ShapeDtypeStruct((n_pad, c_pad), jnp.float32),
        grid_spec=pltpu.PrefetchScalarGridSpec(
            num_scalar_prefetch=0,
            grid=(num_feat, 2, num_tiles),        # (feature-tile, phase, row-tile)
            in_specs=[
                pl.BlockSpec((tm, c_in), lambda f, p, i: (i, 0)),     # agg row tile (bf16)
                pl.BlockSpec((tm, c_in), lambda f, p, i: (i, 0)),     # x   row tile (bf16)
                pl.BlockSpec((c_in, cf), lambda f, p, i: (0, f)),     # W_rel feature block
                pl.BlockSpec((c_in, cf), lambda f, p, i: (0, f)),     # W_root feature block
                pl.BlockSpec((1, cf), lambda f, p, i: (0, f)),        # gamma
                pl.BlockSpec((1, cf), lambda f, p, i: (0, f)),        # beta
            ],
            # Phase 0 never writes the output: pin its row-block index to 0 so no bogus
            # write-back traffic occurs; phase 1 walks the row tiles monotonically.
            out_specs=pl.BlockSpec((tm, cf), lambda f, p, i: (i * p, f)),
            scratch_shapes=[
                pltpu.VMEM((1, cf), jnp.float32),   # sum(h - c)
                pltpu.VMEM((1, cf), jnp.float32),   # sum((h - c)^2)
                pltpu.VMEM((1, cf), jnp.float32),   # shift reference c (first-tile col mean)
                pltpu.VMEM((1, cf), jnp.float32),   # folded scale = rsqrt(var+eps)*gamma
                pltpu.VMEM((1, cf), jnp.float32),   # folded shift = beta - mean*scale
            ],
        ),
        compiler_params=pltpu.CompilerParams(
            # BN stats accumulate across (phase, row-tile) -> sequential; feature tiles are
            # independent -> parallel (megacore sharding on v7x).
            dimension_semantics=("parallel", "arbitrary", "arbitrary"),
            vmem_limit_bytes=vmem_limit,
        ),
    )(agg_p, x_p, w_rel_p, w_root_p, gamma_p, beta_p)

    return out_p[:n, :c_out]


def reference(x, edge_index, w_rel, w_root, b_rel, gamma, beta):
    # Independent dense-adjacency f32 reference (including the bias, which must cancel).
    n = x.shape[0]
    adj = jnp.zeros((n, n), dtype=jnp.float32).at[edge_index[1], edge_index[0]].add(1.0)
    h = adj @ x @ w_rel + b_rel + x @ w_root
    mean = jnp.mean(h, axis=0, keepdims=True)
    var = jnp.mean((h - mean) ** 2, axis=0, keepdims=True)
    y = (h - mean) / jnp.sqrt(var + EPS) * gamma + beta
    return jnp.where(y >= 0, y, NEG_SLOPE * y)


if __name__ == "__main__":
    key = jax.random.PRNGKey(0)
    k_x, k_e, k_wr, k_wo, k_br, k_g, k_b = jax.random.split(key, 7)

    # Small shapes; N deliberately NOT a multiple of the row tile to exercise padding/masking.
    N, E, C_IN, C_OUT = 50, 128, 16, 32

    x = jax.random.normal(k_x, (N, C_IN), dtype=jnp.float32)
    edge_index = jax.random.randint(k_e, (2, E), 0, N, dtype=jnp.int32)

    w_rel = jax.random.normal(k_wr, (C_IN, C_OUT), dtype=jnp.float32) * (1.0 / jnp.sqrt(C_IN))
    w_root = jax.random.normal(k_wo, (C_IN, C_OUT), dtype=jnp.float32) * (1.0 / jnp.sqrt(C_IN))
    b_rel = jax.random.normal(k_br, (1, C_OUT), dtype=jnp.float32) * 0.01
    gamma = 1.0 + 0.1 * jax.random.normal(k_g, (1, C_OUT), dtype=jnp.float32)
    beta = 0.1 * jax.random.normal(k_b, (1, C_OUT), dtype=jnp.float32)

    ref = reference(x, edge_index, w_rel, w_root, b_rel, gamma, beta)

    # Small explicit row tile -> multiple row tiles, exercises the two-phase accumulation.
    out_multi = jax.block_until_ready(
        graph_conv_batch_norm(x, edge_index, w_rel, w_root, b_rel, gamma, beta, row_tile=16))
    # Auto-sized tile (single tile for this tiny graph).
    out_auto = jax.block_until_ready(
        graph_conv_batch_norm(x, edge_index, w_rel, w_root, b_rel, gamma, beta))

    for out in (out_multi, out_auto):
        assert out.shape == (N, C_OUT)
        err = float(jnp.max(jnp.abs(out - ref)))
        # bf16-streamed matmul vs f32 reference -> loose-ish tolerance.
        assert jnp.allclose(out, ref, atol=5e-2, rtol=5e-2), f"mismatch vs reference: {err}"

    print("KERNEL_OK")
</pallas_src>

<mosaic_0001>
module attributes {stable_mosaic.version = 11 : i64} {
  func.func @_gcbn_kernel(%arg0: i32, %arg1: i32, %arg2: i32, %arg3: memref<16x16xbf16, #tpu.memory_space<vmem>>, %arg4: memref<16x16xbf16, #tpu.memory_space<vmem>>, %arg5: memref<16x128xbf16, #tpu.memory_space<vmem>>, %arg6: memref<16x128xbf16, #tpu.memory_space<vmem>>, %arg7: memref<1x128xf32, #tpu.memory_space<vmem>>, %arg8: memref<1x128xf32, #tpu.memory_space<vmem>>, %arg9: memref<16x128xf32, #tpu.memory_space<vmem>>, %arg10: memref<1x128xf32, #tpu.memory_space<vmem>>, %arg11: memref<1x128xf32, #tpu.memory_space<vmem>>, %arg12: memref<1x128xf32, #tpu.memory_space<vmem>>, %arg13: memref<1x128xf32, #tpu.memory_space<vmem>>, %arg14: memref<1x128xf32, #tpu.memory_space<vmem>>) attributes {dimension_semantics = [#tpu.dimension_semantics<parallel>, #tpu.dimension_semantics<arbitrary>, #tpu.dimension_semantics<arbitrary>], iteration_bounds = array<i64: 1, 2, 4>, scalar_prefetch = 0 : i64, scratch_operands = 5 : i64, tpu.core_type = #tpu.core_type<tc>, window_params = [{transform_indices = @transform_0, window_bounds = array<i64: 16, 16>}, {transform_indices = @transform_1, window_bounds = array<i64: 16, 16>}, {transform_indices = @transform_2, window_bounds = array<i64: 16, 128>}, {transform_indices = @transform_3, window_bounds = array<i64: 16, 128>}, {transform_indices = @transform_4, window_bounds = array<i64: 1, 128>}, {transform_indices = @transform_5, window_bounds = array<i64: 1, 128>}, {transform_indices = @transform_6, window_bounds = array<i64: 16, 128>}]} {
    %c0 = arith.constant 0 : index
    %c0_0 = arith.constant 0 : index
    %0 = vector.load %arg3[%c0, %c0_0] : memref<16x16xbf16, #tpu.memory_space<vmem>>, vector<16x16xbf16>
    %c0_1 = arith.constant 0 : index
    %c0_2 = arith.constant 0 : index
    %1 = vector.load %arg5[%c0_1, %c0_2] : memref<16x128xbf16, #tpu.memory_space<vmem>>, vector<16x128xbf16>
    %cst = arith.constant dense<0.000000e+00> : vector<16x128xf32>
    %2 = tpu.matmul %0, %1, %cst {dimension_numbers = #tpu.dot_dimension_numbers<[1], [0], [0], [1], [0, 0, 1, 1], [], []>} : vector<16x16xbf16>, vector<16x128xbf16>, vector<16x128xf32> -> vector<16x128xf32>
    %c0_3 = arith.constant 0 : index
    %c0_4 = arith.constant 0 : index
    %3 = vector.load %arg4[%c0_3, %c0_4] : memref<16x16xbf16, #tpu.memory_space<vmem>>, vector<16x16xbf16>
    %c0_5 = arith.constant 0 : index
    %c0_6 = arith.constant 0 : index
    %4 = vector.load %arg6[%c0_5, %c0_6] : memref<16x128xbf16, #tpu.memory_space<vmem>>, vector<16x128xbf16>
    %cst_7 = arith.constant dense<0.000000e+00> : vector<16x128xf32>
    %5 = tpu.matmul %3, %4, %cst_7 {dimension_numbers = #tpu.dot_dimension_numbers<[1], [0], [0], [1], [0, 0, 1, 1], [], []>} : vector<16x16xbf16>, vector<16x128xbf16>, vector<16x128xf32> -> vector<16x128xf32>
    %6 = arith.addf %2, %5 : vector<16x128xf32>
    %c0_i32 = arith.constant 0 : i32
    %7 = arith.cmpi eq, %arg1, %c0_i32 : i32
    %c0_i32_8 = arith.constant 0 : i32
    %8 = arith.cmpi eq, %arg2, %c0_i32_8 : i32
    %9 = arith.andi %7, %8 : i1
    %10 = arith.extui %9 : i1 to i32
    %c0_i32_9 = arith.constant 0 : i32
    %11 = arith.cmpi ne, %10, %c0_i32_9 : i32
    scf.if %11 {
      %cst_16 = arith.constant 0.000000e+00 : f32
      %23 = vector.broadcast %cst_16 : f32 to vector<1x128xf32>
      %c0_17 = arith.constant 0 : index
      %c0_18 = arith.constant 0 : index
      %24 = vector.load %arg10[%c0_17, %c0_18] : memref<1x128xf32, #tpu.memory_space<vmem>>, vector<1x128xf32>
      tpu.vector_store %arg10[%c0_17, %c0_18], %23 {strides = array<i32>} : memref<1x128xf32, #tpu.memory_space<vmem>>, vector<1x128xf32>,
      %cst_19 = arith.constant 0.000000e+00 : f32
      %25 = vector.broadcast %cst_19 : f32 to vector<1x128xf32>
      %c0_20 = arith.constant 0 : index
      %c0_21 = arith.constant 0 : index
      %26 = vector.load %arg11[%c0_20, %c0_21] : memref<1x128xf32, #tpu.memory_space<vmem>>, vector<1x128xf32>
      tpu.vector_store %arg11[%c0_20, %c0_21], %25 {strides = array<i32>} : memref<1x128xf32, #tpu.memory_space<vmem>>, vector<1x128xf32>,
      %cst_22 = arith.constant dense<0.000000e+00> : vector<128xf32>
      %27 = vector.multi_reduction <add>, %6, %cst_22 [0] : vector<16x128xf32> to vector<128xf32>
      %28 = vector.shape_cast %27 : vector<128xf32> to vector<1x128xf32>
      %cst_23 = arith.constant 6.250000e-02 : f32
      %29 = vector.broadcast %cst_23 : f32 to vector<1x128xf32>
      %30 = arith.mulf %28, %29 : vector<1x128xf32>
      %c0_24 = arith.constant 0 : index
      %c0_25 = arith.constant 0 : index
      %31 = vector.load %arg12[%c0_24, %c0_25] : memref<1x128xf32, #tpu.memory_space<vmem>>, vector<1x128xf32>
      tpu.vector_store %arg12[%c0_24, %c0_25], %30 {strides = array<i32>} : memref<1x128xf32, #tpu.memory_space<vmem>>, vector<1x128xf32>,
    } else {
    }
    %c0_i32_10 = arith.constant 0 : i32
    %12 = arith.cmpi eq, %arg1, %c0_i32_10 : i32
    %13 = arith.extui %12 : i1 to i32
    %c0_i32_11 = arith.constant 0 : i32
    %14 = arith.cmpi ne, %13, %c0_i32_11 : i32
    scf.if %14 {
      %23 = tpu.iota {dimensions = array<i32: 0>} : vector<16x1xi32>
      %c16_i32 = arith.constant 16 : i32
      %24 = arith.muli %arg2, %c16_i32 : i32
      %25 = vector.broadcast %24 : i32 to vector<16x1xi32>
      %26 = arith.addi %23, %25 : vector<16x1xi32>
      %c50_i32 = arith.constant 50 : i32
      %27 = vector.broadcast %c50_i32 : i32 to vector<16x1xi32>
      %28 = arith.cmpi slt, %26, %27 : vector<16x1xi32>
      %29 = arith.extui %28 : vector<16x1xi1> to vector<16x1xi32>
      %30 = arith.sitofp %29 : vector<16x1xi32> to vector<16x1xf32>
      %c0_16 = arith.constant 0 : index
      %c0_17 = arith.constant 0 : index
      %31 = vector.load %arg12[%c0_16, %c0_17] : memref<1x128xf32, #tpu.memory_space<vmem>>, vector<1x128xf32>
      %32 = vector.broadcast %31 : vector<1x128xf32> to vector<16x128xf32>
      %33 = arith.subf %6, %32 : vector<16x128xf32>
      %34 = vector.broadcast %30 : vector<16x1xf32> to vector<16x128xf32>
      %35 = arith.mulf %33, %34 : vector<16x128xf32>
      %c0_18 = arith.constant 0 : index
      %c0_19 = arith.constant 0 : index
      %36 = vector.load %arg10[%c0_18, %c0_19] : memref<1x128xf32, #tpu.memory_space<vmem>>, vector<1x128xf32>
      %cst_20 = arith.constant dense<0.000000e+00> : vector<128xf32>
      %37 = vector.multi_reduction <add>, %35, %cst_20 [0] : vector<16x128xf32> to vector<128xf32>
      %38 = vector.shape_cast %37 : vector<128xf32> to vector<1x128xf32>
      %39 = arith.addf %36, %38 : vector<1x128xf32>
      %c0_21 = arith.constant 0 : index
      %c0_22 = arith.constant 0 : index
      %40 = vector.load %arg10[%c0_21, %c0_22] : memref<1x128xf32, #tpu.memory_space<vmem>>, vector<1x128xf32>
      tpu.vector_store %arg10[%c0_21, %c0_22], %39 {strides = array<i32>} : memref<1x128xf32, #tpu.memory_space<vmem>>, vector<1x128xf32>,
      %c0_23 = arith.constant 0 : index
      %c0_24 = arith.constant 0 : index
      %41 = vector.load %arg11[%c0_23, %c0_24] : memref<1x128xf32, #tpu.memory_space<vmem>>, vector<1x128xf32>
      %42 = arith.mulf %35, %35 : vector<16x128xf32>
      %cst_25 = arith.constant dense<0.000000e+00> : vector<128xf32>
      %43 = vector.multi_reduction <add>, %42, %cst_25 [0] : vector<16x128xf32> to vector<128xf32>
      %44 = vector.shape_cast %43 : vector<128xf32> to vector<1x128xf32>
      %45 = arith.addf %41, %44 : vector<1x128xf32>
      %c0_26 = arith.constant 0 : index
      %c0_27 = arith.constant 0 : index
      %46 = vector.load %arg11[%c0_26, %c0_27] : memref<1x128xf32, #tpu.memory_space<vmem>>, vector<1x128xf32>
      tpu.vector_store %arg11[%c0_26, %c0_27], %45 {strides = array<i32>} : memref<1x128xf32, #tpu.memory_space<vmem>>, vector<1x128xf32>,
    } else {
    }
    %c1_i32 = arith.constant 1 : i32
    %15 = arith.cmpi eq, %arg1, %c1_i32 : i32
    %c0_i32_12 = arith.constant 0 : i32
    %16 = arith.cmpi eq, %arg2, %c0_i32_12 : i32
    %17 = arith.andi %15, %16 : i1
    %18 = arith.extui %17 : i1 to i32
    %c0_i32_13 = arith.constant 0 : i32
    %19 = arith.cmpi ne, %18, %c0_i32_13 : i32
    scf.if %19 {
      %c0_16 = arith.constant 0 : index
      %c0_17 = arith.constant 0 : index
      %23 = vector.load %arg10[%c0_16, %c0_17] : memref<1x128xf32, #tpu.memory_space<vmem>>, vector<1x128xf32>
      %cst_18 = arith.constant 2.000000e-02 : f32
      %24 = vector.broadcast %cst_18 : f32 to vector<1x128xf32>
      %25 = arith.mulf %23, %24 : vector<1x128xf32>
      %c0_19 = arith.constant 0 : index
      %c0_20 = arith.constant 0 : index
      %26 = vector.load %arg11[%c0_19, %c0_20] : memref<1x128xf32, #tpu.memory_space<vmem>>, vector<1x128xf32>
      %cst_21 = arith.constant 2.000000e-02 : f32
      %27 = vector.broadcast %cst_21 : f32 to vector<1x128xf32>
      %28 = arith.mulf %26, %27 : vector<1x128xf32>
      %29 = arith.mulf %25, %25 : vector<1x128xf32>
      %30 = arith.subf %28, %29 : vector<1x128xf32>
      %cst_22 = arith.constant 0.000000e+00 : f32
      %31 = vector.broadcast %cst_22 : f32 to vector<1x128xf32>
      %32 = arith.maximumf %30, %31 : vector<1x128xf32>
      %c0_23 = arith.constant 0 : index
      %c0_24 = arith.constant 0 : index
      %33 = vector.load %arg12[%c0_23, %c0_24] : memref<1x128xf32, #tpu.memory_space<vmem>>, vector<1x128xf32>
      %34 = arith.addf %33, %25 : vector<1x128xf32>
      %cst_25 = arith.constant 9.99999974E-6 : f32
      %35 = vector.broadcast %cst_25 : f32 to vector<1x128xf32>
      %36 = arith.addf %32, %35 : vector<1x128xf32>
      %37 = math.rsqrt %36 : vector<1x128xf32>
      %c0_26 = arith.constant 0 : index
      %c0_27 = arith.constant 0 : index
      %38 = vector.load %arg7[%c0_26, %c0_27] : memref<1x128xf32, #tpu.memory_space<vmem>>, vector<1x128xf32>
      %39 = arith.mulf %37, %38 : vector<1x128xf32>
      %c0_28 = arith.constant 0 : index
      %c0_29 = arith.constant 0 : index
      %40 = vector.load %arg13[%c0_28, %c0_29] : memref<1x128xf32, #tpu.memory_space<vmem>>, vector<1x128xf32>
      tpu.vector_store %arg13[%c0_28, %c0_29], %39 {strides = array<i32>} : memref<1x128xf32, #tpu.memory_space<vmem>>, vector<1x128xf32>,
      %c0_30 = arith.constant 0 : index
      %c0_31 = arith.constant 0 : index
      %41 = vector.load %arg8[%c0_30, %c0_31] : memref<1x128xf32, #tpu.memory_space<vmem>>, vector<1x128xf32>
      %42 = arith.mulf %34, %39 : vector<1x128xf32>
      %43 = arith.subf %41, %42 : vector<1x128xf32>
      %c0_32 = arith.constant 0 : index
      %c0_33 = arith.constant 0 : index
      %44 = vector.load %arg14[%c0_32, %c0_33] : memref<1x128xf32, #tpu.memory_space<vmem>>, vector<1x128xf32>
      tpu.vector_store %arg14[%c0_32, %c0_33], %43 {strides = array<i32>} : memref<1x128xf32, #tpu.memory_space<vmem>>, vector<1x128xf32>,
    } else {
    }
    %c1_i32_14 = arith.constant 1 : i32
    %20 = arith.cmpi eq, %arg1, %c1_i32_14 : i32
    %21 = arith.extui %20 : i1 to i32
    %c0_i32_15 = arith.constant 0 : i32
    %22 = arith.cmpi ne, %21, %c0_i32_15 : i32
    scf.if %22 {
      %c0_16 = arith.constant 0 : index
      %c0_17 = arith.constant 0 : index
      %23 = vector.load %arg13[%c0_16, %c0_17] : memref<1x128xf32, #tpu.memory_space<vmem>>, vector<1x128xf32>
      %24 = vector.broadcast %23 : vector<1x128xf32> to vector<16x128xf32>
      %25 = arith.mulf %6, %24 : vector<16x128xf32>
      %c0_18 = arith.constant 0 : index
      %c0_19 = arith.constant 0 : index
      %26 = vector.load %arg14[%c0_18, %c0_19] : memref<1x128xf32, #tpu.memory_space<vmem>>, vector<1x128xf32>
      %27 = vector.broadcast %26 : vector<1x128xf32> to vector<16x128xf32>
      %28 = arith.addf %25, %27 : vector<16x128xf32>
      %cst_20 = arith.constant 0.000000e+00 : f32
      %29 = vector.broadcast %cst_20 : f32 to vector<16x128xf32>
      %30 = arith.cmpf oge, %28, %29 : vector<16x128xf32>
      %cst_21 = arith.constant 1.000000e-01 : f32
      %31 = vector.broadcast %cst_21 : f32 to vector<16x128xf32>
      %32 = arith.mulf %31, %28 : vector<16x128xf32>
      %33 = arith.select %30, %28, %32 : vector<16x128xi1>, vector<16x128xf32>
      %c0_22 = arith.constant 0 : index
      %c0_23 = arith.constant 0 : index
      %34 = vector.load %arg9[%c0_22, %c0_23] : memref<16x128xf32, #tpu.memory_space<vmem>>, vector<16x128xf32>
      tpu.vector_store %arg9[%c0_22, %c0_23], %33 {strides = array<i32>} : memref<16x128xf32, #tpu.memory_space<vmem>>, vector<16x128xf32>,
    } else {
    }
    return
  }
  func.func @transform_0(%arg0: i32, %arg1: i32, %arg2: i32) -> (i32, i32) {
    %c0_i32 = arith.constant 0 : i32
    %c0_i32_0 = arith.constant 0 : i32
    return %arg2, %c0_i32 : i32, i32
  }
  func.func @transform_1(%arg0: i32, %arg1: i32, %arg2: i32) -> (i32, i32) {
    %c0_i32 = arith.constant 0 : i32
    %c0_i32_0 = arith.constant 0 : i32
    return %arg2, %c0_i32 : i32, i32
  }
  func.func @transform_2(%arg0: i32, %arg1: i32, %arg2: i32) -> (i32, i32) {
    %c0_i32 = arith.constant 0 : i32
    %c0_i32_0 = arith.constant 0 : i32
    return %c0_i32, %arg0 : i32, i32
  }
  func.func @transform_3(%arg0: i32, %arg1: i32, %arg2: i32) -> (i32, i32) {
    %c0_i32 = arith.constant 0 : i32
    %c0_i32_0 = arith.constant 0 : i32
    return %c0_i32, %arg0 : i32, i32
  }
  func.func @transform_4(%arg0: i32, %arg1: i32, %arg2: i32) -> (i32, i32) {
    %c0_i32 = arith.constant 0 : i32
    %c0_i32_0 = arith.constant 0 : i32
    return %c0_i32, %arg0 : i32, i32
  }
  func.func @transform_5(%arg0: i32, %arg1: i32, %arg2: i32) -> (i32, i32) {
    %c0_i32 = arith.constant 0 : i32
    %c0_i32_0 = arith.constant 0 : i32
    return %c0_i32, %arg0 : i32, i32
  }
  func.func @transform_6(%arg0: i32, %arg1: i32, %arg2: i32) -> (i32, i32) {
    %0 = arith.muli %arg2, %arg1 : i32
    %c0_i32 = arith.constant 0 : i32
    return %0, %arg0 : i32, i32
  }
}

</mosaic_0001>

<bundles_post_ra>
// kernel: tpu_custom_call.1
= control target key start
LH: loop header
LB: loop body
LE: loop exit
PB: predicated region body
PF: predicated region fallthrough
CT: control target
= control target key end

     0   :  { %s1843_s0 = inlined_call_operand.hbm [shape: bf16[64,16], index: 0, kind: input, shape index: {}]   ;;  %s1844_s1 = inlined_call_operand.hbm [shape: bf16[64,16], index: 1, kind: input, shape index: {}]   ;;  %s1845_s2 = inlined_call_operand.hbm [shape: bf16[16,128], index: 2, kind: input, shape index: {}]   ;;  %s1846_s3 = inlined_call_operand.hbm [shape: bf16[16,128], index: 3, kind: input, shape index: {}]   ;;  %s1847_s4 = inlined_call_operand.hbm [shape: f32[1,128], index: 4, kind: input, shape index: {}]   ;;  %s1848_s5 = inlined_call_operand.hbm [shape: f32[1,128], index: 5, kind: input, shape index: {}]   ;;  %s1849_s6 = inlined_call_operand.hbm [shape: f32[64,128], index: 6, kind: output, shape index: {}]  }
   0x1   :  { %1866 = sst [smem:[#allocation31_spill]] %s1843_s0 }
   0x2   :  { %1867 = sst [smem:[#allocation32_spill]] %s1845_s2 }
   0x3   :  { %1868 = sst [smem:[#allocation33_spill]] %s1846_s3 }
   0x4   :  { %1869 = sst [smem:[#allocation34_spill]] %s1847_s4 }
   0x5   :  { %1870 = sst [smem:[#allocation35_spill]] %s1849_s6 }
   0x6   :  { %11 = vsyncpa [#allocation8], 0 }
   0x7   :  { %13 = vsyncpa [#allocation8 + $0x1], 0 }
   0x8   :  { %14 = vsyncpa [#allocation11], 0 }
   0x9   :  { %16 = vsyncpa [#allocation11 + $0x1], 0 }
   0xa   :  { %17 = vsyncpa [#allocation14], 0 }
   0xb   :  { %18 = vsyncpa [#allocation17], 0 }
   0xc   :  { %19 = vsyncpa [#allocation9], 0 }
   0xd   :  { %21 = vsyncpa [#allocation9 + $0x1], 0  ;;  %s1417_s21 = smov 0   ;;  %s1419_s22 = smov 0  }
   0xe   :  { %s1421_s23 = smov 0   ;;  %s1423_s24 = smov 0  }
   0xf   :  { %s1425_s25 = smov 0   ;;  %s1427_s26 = smov 0  }
  0x10   :  { %s1429_s27 = smov 0   ;;  %s1431_s28 = smov 0  }
  0x11   :  { %s1433_s29 = smov 0   ;;  %s1435_s30 = smov 0  }
  0x12   :  { %s1437_s7 = smov 0  }
  0x13 LB: > { %1871 = sst [smem:[#allocation25_spill]] %s1325_s21  ;;  %s1471_s8 = sadd.s32 4294967295, %s1365_s7   ;;  %s1365_s7 = sphi %s1437_s7, %s27_s7   ;;  %s1361_s30 = sphi %s1435_s30, %s1926_s30   ;;  %s1357_s29 = sphi %s1433_s29, %s1925_s29   ;;  %s1353_s28 = sphi %s1431_s28, %s1924_s28   ;;  %s1349_s27 = sphi %s1429_s27, %s1923_s27   ;;  %s1345_s26 = sphi %s1427_s26, %s1922_s26   ;;  %s1341_s25 = sphi %s1425_s25, %s1921_s25   ;;  %s1337_s24 = sphi %s1423_s24, %s1920_s24   ;;  %s1333_s23 = sphi %s1421_s23, %s1919_s23   ;;  %s1329_s22 = sphi %s1419_s22, %s1918_s22   ;;  %s1325_s21 = sphi %s1417_s21, %s1917_s21  }
  0x14   : > { %1872 = sst [smem:[#allocation26_spill]] %s1329_s22  ;;  %s832_s9 = sadd.s32 4294967294, %s1365_s7  }
  0x15   : > { %1873 = sst [smem:[#allocation27_spill]] %s1349_s27  ;;  %p66_p0 = scmp.ne.s32.totalorder %s1341_s25, %s1337_s24 }
  0x16   : > { %1874 = sst [smem:[#allocation28_spill]] %s1353_s28  ;;  %p1852_p1 = scmp.eq.s32.totalorder %s1471_s8, 0 }
  0x17   : > { %p223_p2 = scmp.ne.s32.totalorder %s1333_s23, %s1329_s22  ;;  %p224_p3 = scmp.eq.s32.totalorder %s1471_s8, 7 }
  0x18   : > { %p1481_p4 = por %p1852_p1, %p66_p0  ;;  %p229_p5 = scmp.ne.s32.totalorder %s1329_s22, %s1325_s21 }
  0x19   : > { %p1487_p6 = por %p224_p3, %p223_p2  ;;  %p230_p7 = scmp.eq.s32.totalorder %s832_s9, 7 }
  0x1a   : > { %s1875_s10 = scalar_select %p1481_p4, 1, 0 }
  0x1b   : > { %s1876_s11 = scalar_select %p1487_p6, 1, 0 }
  0x1c   : > { %p833_p8 = scmp.ge.s32.totalorder %s1365_s7, 1  ;;  %p237_p9 = scmp.lt.s32.totalorder %s1365_s7, 9 }
  0x1d   : > { %1877 = sst [smem:[#allocation29_spill]] %s1876_s11  ;;  %p1493_p10 = por %p230_p7, %p229_p5 }
  0x1e   : > { %p1497_p11 = pnand %p833_p8, %p237_p9  ;;  %s1367_s14 = smov [#allocation12]  }
  0x1f   : > { %s1878_s12 = scalar_select %p1493_p10, 1, 0 }
  0x20   : > { %s1880_s13 = scalar_select %p1497_p11, 1, 0 }
  0x21   : > { %1879 = sst [smem:[#allocation30_spill]] %s1878_s12  ;;  %s251_s15 = sshll.u32 %s1367_s14, 4  ;;  %s252_s15 = int_to_ptr.vmem [resolvable:$true] %s251_s15 }
  0x22   : > { %p915_p12 = pneg %p1497_p11  ;;  %s1368_s17 = smov [#allocation13]  }
  0x23   : > { %s266_s18 = sshll.u32 %s1368_s17, 4  ;;  %s1882_s2 = sld [smem:[#allocation32_spill]]  ;;  %s1509_s18 = int_to_ptr.vmem [resolvable:$true] %s266_s18 }
  0x24   : > { %p1505_p13 = pnand %p915_p12, %p1852_p1 }
  0x26   : > { %p1519_p2 = pneg %p1505_p13 }
  0x29   : > { %s1055_s24 = scalar_lea.hbm %s1882_s2, 128 }
  0x2a   : > { %p1056_p0 = scmp.ne.s32.totalorder %s1882_s2, %s1055_s24  ;;  %p1062_p7 = scmp.lt.u32.totalorder %s1055_s24, %s1882_s2 }
  0x2c   : > { %p1058_p3 = pnand %p1519_p2, %p1056_p0 }
  0x2e   : > { %p1059_p5 = pneg %p1058_p3 }
  0x30   : > { %p1064_p8 = pnand %p1062_p7, %p1059_p5 }
  0x32   : > { %1067 = shalt.err (!%p1064_p8)
}
  0x33   : > { %s1068_s19 = scalar_lea.vmem %s252_s15, 128  ;;  %p1076_p10 = scmp.lt.s32.totalorder %s252_s15, %s252_s15 }
  0x34   : > { %p1069_p9 = scmp.ne.s32.totalorder %s252_s15, %s1068_s19  ;;  %p1077_p6 = scmp.lt.s32.totalorder %s1068_s19, %s1068_s19 }
  0x36   : > { %p1071_p12 = pnand %p1069_p9, %p1519_p2  ;;  %p1078_p4 = por %p1077_p6, %p1076_p10 }
  0x38   : > { %p1072_p1 = pneg %p1071_p12 }
  0x3a   : > { %p1079_p11 = pnand %p1078_p4, %p1072_p1 }
  0x3c   : > { %1082 = shalt.err (!%p1079_p11)
}
  0x3d   : > { %s1862_s12 = smov 64   ;;  %s1864_s20 = smov 4  }
  0x3e   : > { %918 = dma.hbm_to_vmem [thread:$0]  (!%p1505_p13), %s1882_s2, 128, %s252_s15, [#allocation11], %s1862_s12, %s1862_s12, %s1864_s20  }
  0x3f   : > { %s1884_s3 = sld [smem:[#allocation33_spill]] }
  0x45   : > { %s1083_s6 = scalar_lea.hbm %s1884_s3, 128 }
  0x46   : > { %p1084_p1 = scmp.ne.s32.totalorder %s1884_s3, %s1083_s6  ;;  %p1090_p10 = scmp.lt.u32.totalorder %s1083_s6, %s1884_s3 }
  0x48   : > { %p1086_p4 = pnand %p1084_p1, %p1519_p2 }
  0x4a   : > { %p1087_p6 = pneg %p1086_p4 }
  0x4c   : > { %p1092_p11 = pnand %p1090_p10, %p1087_p6 }
  0x4e   : > { %1095 = shalt.err (!%p1092_p11)
}
  0x4f   : > { %s1096_s15 = scalar_lea.vmem %s1509_s18, 128  ;;  %p1104_p7 = scmp.lt.s32.totalorder %s1509_s18, %s1509_s18 }
  0x50   : > { %p1097_p0 = scmp.ne.s32.totalorder %s1509_s18, %s1096_s15  ;;  %p1105_p8 = scmp.lt.s32.totalorder %s1096_s15, %s1096_s15 }
  0x52   : > { %p1099_p3 = pnand %p1097_p0, %p1519_p2  ;;  %p1106_p9 = por %p1105_p8, %p1104_p7 }
  0x54   : > { %p1100_p5 = pneg %p1099_p3 }
  0x56   : > { %p1107_p12 = pnand %p1106_p9, %p1100_p5 }
  0x58   : > { %1110 = shalt.err (!%p1107_p12)
}
  0x59   : > { %921 = dma.hbm_to_vmem [thread:$0]  (!%p1505_p13), %s1884_s3, 128, %s1509_s18, [#allocation14], %s1862_s12, %s1862_s12, %s1864_s20  }
  0x5a   : > { %s1371_s28 = smov [#allocation15]   ;;  %s1372_s21 = smov [#allocation16]  }
  0x5b   : > { %s282_s11 = sshll.u32 %s1371_s28, 4  ;;  %s295_s24 = sshll.u32 %s1372_s21, 4  ;;  %s283_s11 = int_to_ptr.vmem [resolvable:$true] %s282_s11  ;;  %s296_s24 = int_to_ptr.vmem [resolvable:$true] %s295_s24 }
  0x5c   : > { %s1885_s4 = sld [smem:[#allocation34_spill]] }
  0x62   : > { %s1111_s19 = scalar_lea.hbm %s1885_s4, 16 }
  0x63   : > { %p1112_p1 = scmp.ne.s32.totalorder %s1885_s4, %s1111_s19  ;;  %p1118_p10 = scmp.lt.u32.totalorder %s1111_s19, %s1885_s4 }
  0x65   : > { %p1114_p4 = pnand %p1112_p1, %p1519_p2 }
  0x67   : > { %p1115_p6 = pneg %p1114_p4 }
  0x69   : > { %p1120_p11 = pnand %p1118_p10, %p1115_p6 }
  0x6b   : > { %1123 = shalt.err (!%p1120_p11)
}
  0x6c   : > { %s1124_s18 = scalar_lea.vmem %s283_s11, 16  ;;  %s1131_s27 = scalar_lea.vmem %s283_s11, 32 }
  0x6d   : > { %p1125_p0 = scmp.ne.s32.totalorder %s283_s11, %s1124_s18  ;;  %p1132_p7 = scmp.lt.s32.totalorder %s283_s11, %s283_s11 }
  0x6e   : > { %p1133_p8 = scmp.lt.s32.totalorder %s1131_s27, %s1124_s18 }
  0x6f   : > { %p1127_p3 = pnand %p1125_p0, %p1519_p2 }
  0x70   : > { %p1134_p9 = por %p1133_p8, %p1132_p7 }
  0x71   : > { %p1128_p5 = pneg %p1127_p3 }
  0x73   : > { %p1135_p12 = pnand %p1134_p9, %p1128_p5 }
  0x75   : > { %1138 = shalt.err (!%p1135_p12)
}
  0x76   : > { %924 = dma.hbm_to_vmem [thread:$0]  (!%p1505_p13), %s1885_s4, 16, %s283_s11, [#allocation14]  }
  0x77   : > { %s1139_s9 = scalar_lea.hbm %s1848_s5, 16 }
  0x78   : > { %p1140_p1 = scmp.ne.s32.totalorder %s1848_s5, %s1139_s9  ;;  %p1146_p10 = scmp.lt.u32.totalorder %s1139_s9, %s1848_s5 }
  0x7a   : > { %p1142_p4 = pnand %p1140_p1, %p1519_p2 }
  0x7c   : > { %p1143_p6 = pneg %p1142_p4 }
  0x7e   : > { %p1148_p11 = pnand %p1146_p10, %p1143_p6 }
  0x80   : > { %1151 = shalt.err (!%p1148_p11)
}
  0x81   : > { %s1152_s18 = scalar_lea.vmem %s296_s24, 16  ;;  %s1159_s11 = scalar_lea.vmem %s296_s24, 32 }
  0x82   : > { %p1153_p0 = scmp.ne.s32.totalorder %s296_s24, %s1152_s18  ;;  %p1160_p7 = scmp.lt.s32.totalorder %s296_s24, %s296_s24 }
  0x83   : > { %p1161_p8 = scmp.lt.s32.totalorder %s1159_s11, %s1152_s18 }
  0x84   : > { %p1155_p3 = pnand %p1153_p0, %p1519_p2 }
  0x85   : > { %p1162_p9 = por %p1161_p8, %p1160_p7 }
  0x86   : > { %p1156_p5 = pneg %p1155_p3 }
  0x88   : > { %p1163_p12 = pnand %p1162_p9, %p1156_p5 }
  0x8a   : > { %1166 = shalt.err (!%p1163_p12)
}
  0x8b   : > { %927 = dma.hbm_to_vmem [thread:$0]  (!%p1505_p13), %s1848_s5, 16, %s296_s24, [#allocation17]  }
  0x8c   : > { %s39_s14 = sadd.s32 1, %s1357_s29  ;;  %s42_s16 = sadd.s32 1, %s1361_s30 }
  0x8d   : > { %p40_p2 = scmp.ge.s32.totalorder %s39_s14, 4  ;;  %s53_s28 = sadd.s32 1, %s1345_s26 }
  0x8e   : > { %p60_p1 = scmp.ne.s32.totalorder %s1345_s26, %s1341_s25  ;;  %p61_p4 = scmp.eq.s32.totalorder %s1365_s7, 0 }
  0x8f   : > { %s1928_s14 = smov (%p40_p2, %s39_s14), 0  ;;  %s1930_s16 = smov (!%p40_p2, %s42_s16), %s1361_s30 }
  0x90   : > { %s50_s22 = ssub.s32 %s1357_s29, %s1928_s14  ;;  %p44_p6 = scmp.ge.s32.totalorder %s1930_s16, 2 }
  0x91   : > { %p51_p10 = scmp.eq.s32.totalorder %s50_s22, 0  ;;  %p1611_p13 = por %p61_p4, %p60_p1 }
  0x92   : > { %s206_s21 = smul.u32 %s1357_s29, %s1361_s30  ;;  %s1932_s16 = smov (%p44_p6, %s1930_s16), 0 }
  0x93   : > { %s1620_s9 = scalar_select %p51_p10, %s1345_s26, %s53_s28  }
  0x94   : > { %s207_s17 = smul.u32 %s1932_s16, %s1928_s14  ;;  %s213_s19 = sadd.s32 1, %s1333_s23 }
  0x95   : > { %p943_p11 = scmp.lt.s32.totalorder %s1365_s7, 8  ;;  %s306_s15 = sand.u32 1, %s1345_s26  }
  0x96   : > { %s208_s6 = ssub.s32 %s206_s21, %s207_s17  ;;  %s839_s18 = sshll.u32 %s306_s15, 3 }
  0x97   : > { %p211_p0 = scmp.eq.s32.totalorder %s208_s6, 0  ;;  %s872_s11 = sshll.u32 %s1357_s29, 7 }
  0x98   : > { %s1887_s0 = sld [smem:[#allocation31_spill]]  ;;  %s310_s28 = scalar_lea.vmem [#allocation7], %s839_s18 }
  0x99   : > { %s1629_s27 = scalar_select %p211_p0, %s1333_s23, %s213_s19  }
  0x9a   : > { %s317_s20 = sshll.u32 %s310_s28, 4  ;;  %p1640_p3 = pnand %p943_p11, %p1611_p13  ;;  %s1636_s20 = int_to_ptr.vmem [resolvable:$true] %s317_s20 }
  0x9b   : > { %s1647_s6 = scalar_lea.hbm %s1844_s1, %s872_s11  ;;  %s331_s2 = scalar_lea.vmem [#allocation10], %s839_s18 }
  0x9c   : > { %s1649_s22 = sshll.u32 %s331_s2, 4  ;;  %s1651_s3 = scalar_lea.sflag [#allocation8], %s306_s15  ;;  %s1683_s22 = int_to_ptr.vmem [resolvable:$true] %s1649_s22 }
  0x9d   : > { %p1169_p7 = pneg %p1640_p3 }
  0x9e   : > { %s1634_s12 = scalar_lea.hbm %s1887_s0, %s872_s11  ;;  %s1172_s17 = scalar_lea.hbm %s1887_s0, 512 }
  0x9f   : > { %s1167_s28 = scalar_lea.hbm %s1634_s12, 128  ;;  %p1173_p12 = scmp.lt.u32.totalorder %s1634_s12, %s1887_s0 }
  0xa0   : > { %p1168_p5 = scmp.ne.s32.totalorder %s1634_s12, %s1167_s28  ;;  %p1174_p2 = scmp.lt.u32.totalorder %s1172_s17, %s1167_s28 }
  0xa1   : > { %p1176_p4 = scmp.lt.u32.totalorder %s1167_s28, %s1634_s12 }
  0xa2   : > { %p1170_p8 = pnand %p1169_p7, %p1168_p5  ;;  %p1175_p1 = por %p1174_p2, %p1173_p12 }
  0xa4   : > { %p1171_p9 = pneg %p1170_p8  ;;  %p1177_p6 = por %p1176_p4, %p1175_p1 }
  0xa6   : > { %p1178_p10 = pnand %p1177_p6, %p1171_p9 }
  0xa8   : > { %1181 = shalt.err (!%p1178_p10)
}
  0xa9   : > { %s1182_s15 = scalar_lea.vmem %s1636_s20, 128  ;;  %s1373_s4 = smov [#allocation7]  }
  0xaa   : > { %p1183_p13 = scmp.ne.s32.totalorder %s1636_s20, %s1182_s15  ;;  %s1187_s18 = sshll.u32 %s1373_s4, 4  ;;  %s1188_s18 = int_to_ptr.vmem [resolvable:$false] %s1187_s18 }
  0xab   : > { %s1189_s2 = scalar_lea.vmem %s1188_s18, 256  ;;  %p1190_p5 = scmp.lt.s32.totalorder %s1636_s20, %s1188_s18 }
  0xac   : > { %p1185_p11 = pnand %p1183_p13, %p1169_p7  ;;  %p1191_p8 = scmp.lt.s32.totalorder %s1189_s2, %s1182_s15 }
  0xae   : > { %p1186_p0 = pneg %p1185_p11  ;;  %p1192_p12 = por %p1191_p8, %p1190_p5 }
  0xb0   : > { %p1193_p2 = pnand %p1192_p12, %p1186_p0 }
  0xb2   : > { %1196 = shalt.err (!%p1193_p2)
}
  0xb3   : > { %s1889_s28 = smov 4   ;;  %s1890_s24 = smov 64  }
  0xb4   : > { %931 = dma.hbm_to_vmem [thread:$0]  (!%p1640_p3), %s1634_s12, 128, %s1636_s20, %s1651_s3, %s1890_s24, %s1890_s24, %s1889_s28  }
  0xb5   : > { %s327_s17 = sand.u32 1, %s1365_s7   ;;  %s1197_s11 = scalar_lea.hbm %s1647_s6, 128 }
  0xb6   : > { %s1686_s19 = scalar_lea.sflag [#allocation11], %s327_s17  ;;  %p1198_p9 = scmp.ne.s32.totalorder %s1647_s6, %s1197_s11 }
  0xb7   : > { %s1202_s18 = scalar_lea.hbm %s1844_s1, 512  ;;  %p1203_p6 = scmp.lt.u32.totalorder %s1647_s6, %s1844_s1 }
  0xb8   : > { %p1200_p1 = pnand %p1198_p9, %p1169_p7  ;;  %p1204_p10 = scmp.lt.u32.totalorder %s1202_s18, %s1197_s11 }
  0xb9   : > { %p1206_p11 = scmp.lt.u32.totalorder %s1197_s11, %s1647_s6 }
  0xba   : > { %p1201_p4 = pneg %p1200_p1  ;;  %p1205_p13 = por %p1204_p10, %p1203_p6 }
  0xbc   : > { %p1207_p0 = por %p1206_p11, %p1205_p13 }
  0xbe   : > { %p1208_p5 = pnand %p1207_p0, %p1201_p4 }
  0xc0   : > { %1211 = shalt.err (!%p1208_p5)
}
  0xc1   : > { %s1212_s3 = scalar_lea.vmem %s1683_s22, 128  ;;  %s1374_s12 = smov [#allocation10]  }
  0xc2   : > { %p1213_p8 = scmp.ne.s32.totalorder %s1683_s22, %s1212_s3  ;;  %s1217_s20 = sshll.u32 %s1374_s12, 4  ;;  %s1218_s20 = int_to_ptr.vmem [resolvable:$false] %s1217_s20 }
  0xc3   : > { %s1219_s0 = scalar_lea.vmem %s1218_s20, 256  ;;  %p1220_p9 = scmp.lt.s32.totalorder %s1683_s22, %s1218_s20 }
  0xc4   : > { %p1215_p12 = pnand %p1213_p8, %p1169_p7  ;;  %p1221_p1 = scmp.lt.s32.totalorder %s1219_s0, %s1212_s3 }
  0xc6   : > { %p1216_p2 = pneg %p1215_p12  ;;  %p1222_p6 = por %p1221_p1, %p1220_p9 }
  0xc8   : > { %p1223_p10 = pnand %p1222_p6, %p1216_p2 }
  0xca   : > { %1226 = shalt.err (!%p1223_p10)
}
  0xcb   : > { %934 = dma.hbm_to_vmem [thread:$0]  (!%p1640_p3), %s1647_s6, 128, %s1683_s22, %s1686_s19, %s1890_s24, %s1890_s24, %s1889_s28  }
  0xcc   : > { %p1891_p7 = scmp.ne.s32.totalorder %s1880_s13, 0 }
  0xcd   : > { %s352_s17 = sand.u32 (!%p1891_p7), 1, %s1341_s25   ;;  %p1892_p4 = scmp.ne.s32.totalorder (!%p1891_p7), %s1875_s10, 0 }
  0xce   : > { %350 = sbr.rel (%p1891_p7) target bundleno = 589 (0x24d), region = 44  ;;  %s1718_s11 = sshll.u32 (!%p1891_p7), %s352_s17, 3 }
  0xcf   : > { %s353_s15 = scalar_lea.sflag (!%p1891_p7), [#allocation8], %s352_s17  ;;  %s356_s4 = scalar_lea.vmem (!%p1891_p7), [#allocation7], %s1718_s11 }
  0xd5   : > { %1300 = dma.done.wait (%p1892_p4), %s353_s15, 128  }
  0xd6   : > { %1302 = vsyncadd (%p1892_p4), %s353_s15, 4294967168  ;;  %s361_s21 = sand.u32 1, %s1471_s8   ;;  %s365_s13 = scalar_lea.vmem [#allocation10], %s1718_s11 }
  0xd7   : > { %s362_s6 = scalar_lea.sflag [#allocation11], %s361_s21 }
  0xd8   : > { %1304 = dma.done.wait (%p1892_p4), %s362_s6, 128  }
  0xd9   : > { %1306 = vsyncadd (%p1892_p4), %s362_s6, 4294967168  ;;  %p1893_p3 = scmp.eq.s32.totalorder %s1471_s8, 0 }
  0xdb   : > { %1308 = dma.done.wait (%p1893_p3), [#allocation11], 128   ;;  %p1894_p13 = pmov %p1893_p3 }
  0xdc   : > { %p1895_p11 = pmov %p1893_p3 }
  0xdd   : > { %1310 = vsyncadd (%p1894_p13), [#allocation11], 4294967168 }
  0xde   : > { %1312 = dma.done.wait (%p1895_p11), [#allocation14], 144   ;;  %p1896_p0 = pmov %p1893_p3 }
  0xe0   : > { %1314 = vsyncadd (%p1896_p0), [#allocation14], 4294967152  ;;  %p1897_p5 = pmov %p1896_p0 }
  0xe1   : > { %p1898_p8 = pmov %p1896_p0 }
  0xe2   : > { %1316 = dma.done.wait (%p1897_p5), [#allocation17], 16  }
  0xe3   : > { %1318 = vsyncadd (%p1898_p8), [#allocation17], 4294967280  ;;  %s1899_s10 = sld [smem:[#allocation26_spill]]  ;;  %s1900_s24 = sld [smem:[#allocation28_spill]]  ;;  %v1375_v0 = vmov 0.0   ;;  %vm1376_vm0 = vmmov 0  }
  0xe4   : > { %s1901_s19 = sld [smem:[#allocation27_spill]]  ;;  %879 = vmatprep.subr.bf16.mxu1 %v1375_v0  ;;  %885 = vmatprep.subr.bf16.mxu0 %v1375_v0  ;;  %v1049_v1 = vld [vmem:[#allocation13] sm:$0xff]   ;;  %v1050_v2 = vld [vmem:[#allocation12] sm:$0xff]   ;;  %v1051_v3 = vld [vmem:[%s365_s13] sm:$0xff]   ;;  %vm439_vm1 = vcmask 130048  }
  0xe5   : > { %881 = vmatprep.mubr.msk.bf16.mxu1 %vm1376_vm0, %v1375_v0  ;;  %887 = vmatprep.mubr.msk.bf16.mxu0 %vm1376_vm0, %v1375_v0  ;;  %v1052_v4 = vld [vmem:[%s356_s4] sm:$0xff]  }
  0xe6   : > { %880 = vmatpush3.bf16.msra.mxu1 %v1049_v1  ;;  %886 = vmatpush3.bf16.msra.mxu0 %v1050_v2 }
  0xe9   : > { %s412_s22 = sand.u32 1, %s1899_s10   ;;  %882 = vmatmul.mubr.msk.bf16.vlgmr.msra.gmra.mrb[0].mxu1 %vm439_vm1, %v1051_v3  ;;  %888 = vmatmul.mubr.msk.bf16.vlgmr.msra.gmra.mrb[0].mxu0 %vm439_vm1, %v1052_v4  ;;  %p539_p12 = scmp.eq.s32.totalorder %s1900_s24, 0 }
  0xea   : > { %s852_s28 = sshll.u32 %s412_s22, 4  ;;  %p540_p2 = scmp.eq.s32.totalorder %s1901_s19, 0 }
  0xeb   : > { %s1754_s8 = scalar_lea.vmem [#allocation18], %s852_s28 }
  0xec   : > { %p541_p9 = pnand %p540_p2, %p539_p12 }
  0xed   : > { %v1377_v16 = vmov (!%p541_p9), 0.0  }
  0xee   : > { %545 = vst [vmem:[#allocation2] sm:$0x1] (!%p541_p9), %v1377_v16  ;;  %546 = vst [vmem:[#allocation3] sm:$0x1] (!%p541_p9), %v1377_v16 }
 0x1b9   : > { %544 = sbr.rel (%p541_p9) target bundleno = 466 (0x1d2), region = 72 }
 0x1bc   : > { %v477_v5 = vpop.f32.mrb[0].mxu1  ;;  %v532_v6 = vpop.f32.mrb[0].mxu0 }
 0x1bd   : > { %v883_v7 = vpop.f32.mrb[1].mxu1  ;;  %v1750_v8 = vadd.f32 %v532_v6, %v477_v5  ;;  %v889_v9 = vpop.f32.mrb[1].mxu0 }
 0x1be   : > { %v480_v10 = vpop.f32.mrb[2].mxu1  ;;  %v535_v11 = vpop.f32.mrb[2].mxu0 }
 0x1bf   : > { %v884_v12 = vpop.f32.mrb[3].mxu1  ;;  %v1752_v13 = vadd.f32 %v535_v11, %v480_v10  ;;  %v890_v14 = vpop.f32.mrb[3].mxu0 }
 0x1c1   : > { %v547_v15 = vadd.f32 %v1752_v13, %v1750_v8 }
 0x1c3   : > { %v548_v17 = vrot.slane %v547_v15, 4 }
 0x1c5   : > { %v549_v18 = vadd.f32 %v548_v17, %v547_v15 }
 0x1c7   : > { %v550_v19 = vrot.slane %v549_v18, 2 }
 0x1c9   : > { %v551_v20 = vadd.f32 %v550_v19, %v549_v18 }
 0x1cb   : > { %v552_v21 = vrot.slane %v551_v20, 1 }
 0x1cd   : > { %v553_v22 = vadd.f32 %v552_v21, %v551_v20 }
 0x1cf   : > { %v554_v23 = vmul.f32 0.0625, %v553_v22 }
 0x1d1   : > { %555 = vst [vmem:[#allocation4] sm:$0x1] %v554_v23 }
 0x1d2 PF: > { %s1902_s18 = sld [smem:[#allocation28_spill]] }
 0x1d8   : > { %p859_p1 = scmp.ne.s32.totalorder %s1902_s18, 0 }
 0x1d9   : > { %v559_v24 = vlaneseq (!%p859_p1)  ;;  %s1903_s2 = sld [smem:[#allocation27_spill]] (!%p859_p1)  ;;  %v863_v26 = vld [vmem:[#allocation4] ss:$0 sm:$0xff] (!%p859_p1)  ;;  %v1378_v33 = vmov (!%p859_p1), 0.0   ;;  %v583_v51 = vld [vmem:[#allocation2] sm:$0x1] (!%p859_p1) }
 0x1da   : > { %558 = sbr.rel (%p859_p1) target bundleno = 506 (0x1fa), region = 76  ;;  %v579_v30 = vsub.f32 (!%p859_p1), %v1750_v8, %v863_v26  ;;  %v580_v32 = vsub.f32 (!%p859_p1), %v1752_v13, %v863_v26  ;;  %v593_v54 = vld [vmem:[#allocation3] sm:$0x1] (!%p859_p1) }
 0x1db   : > { %v560_v27 = vshrl.u32 (!%p859_p1), %v559_v24, 7 }
 0x1dd   : > { %v561_v28 = vadd.s32 (!%p859_p1), 8, %v560_v27 }
 0x1df   : > { %s860_s3 = sshll.u32 (!%p859_p1), %s1903_s2, 4 }
 0x1e0   : > { %v563_v25 = vstv (!%p859_p1), %s860_s3 }
 0x1e1   : > { %v564_v29 = vadd.s32 %v563_v25, %v560_v27  ;;  %v565_v31 = vadd.s32 %v563_v25, %v561_v28 }
 0x1e3   : > { %vm566_vm2 = vcmp.lt.s32.totalorder %v564_v29, 50  ;;  %vm567_vm3 = vcmp.lt.s32.totalorder %v565_v31, 50 }
 0x1e4   : > { %v861_v34 = vsel %vm566_vm2, 1.0, %v1378_v33  ;;  %v862_v36 = vsel %vm567_vm3, 1.0, %v1378_v33 }
 0x1e5   : > { %v581_v35 = vmul.f32 %v861_v34, %v579_v30  ;;  %v582_v37 = vmul.f32 %v862_v36, %v580_v32 }
 0x1e7   : > { %v594_v38 = vmul.f32 %v581_v35, %v581_v35  ;;  %v584_v39 = vadd.f32 %v582_v37, %v581_v35  ;;  %v595_v40 = vmul.f32 %v582_v37, %v582_v37 }
 0x1e9   : > { %v585_v41 = vrot.slane %v584_v39, 4  ;;  %v596_v42 = vadd.f32 %v595_v40, %v594_v38 }
 0x1eb   : > { %v586_v43 = vadd.f32 %v585_v41, %v584_v39  ;;  %v597_v44 = vrot.slane %v596_v42, 4 }
 0x1ed   : > { %v587_v45 = vrot.slane %v586_v43, 2  ;;  %v598_v46 = vadd.f32 %v597_v44, %v596_v42 }
 0x1ef   : > { %v588_v47 = vadd.f32 %v587_v45, %v586_v43  ;;  %v599_v48 = vrot.slane %v598_v46, 2 }
 0x1f1   : > { %v589_v49 = vrot.slane %v588_v47, 1  ;;  %v600_v50 = vadd.f32 %v599_v48, %v598_v46 }
 0x1f3   : > { %v590_v52 = vadd.f32 %v589_v49, %v588_v47  ;;  %v601_v53 = vrot.slane %v600_v50, 1 }
 0x1f5   : > { %v591_v55 = vadd.f32 %v590_v52, %v583_v51  ;;  %v602_v56 = vadd.f32 %v601_v53, %v600_v50 }
 0x1f7   : > { %592 = vst [vmem:[#allocation2] sm:$0x1] %v591_v55  ;;  %v603_v57 = vadd.f32 %v602_v56, %v593_v54 }
 0x1f9   : > { %604 = vst [vmem:[#allocation3] sm:$0x1] %v603_v57 }
 0x1fa PF: > { %s1904_s12 = sld [smem:[#allocation28_spill]] }
 0x200   : > { %p605_p6 = scmp.eq.s32.totalorder %s1904_s12, 1 }
 0x202   : > { %p606_p10 = pnand %p605_p6, %p540_p2 }
 0x203   : > { %v610_v58 = vld [vmem:[#allocation2] sm:$0x1] (!%p606_p10)  ;;  %v612_v59 = vld [vmem:[#allocation3] sm:$0x1] (!%p606_p10)  ;;  %v617_v2 = vld [vmem:[#allocation4] sm:$0x1] (!%p606_p10) }
 0x204   : > { %609 = sbr.rel (%p606_p10) target bundleno = 544 (0x220), region = 80  ;;  %v611_v60 = vmul.f32 (!%p606_p10), 0.02, %v610_v58  ;;  %v613_v61 = vmul.f32 (!%p606_p10), 0.02, %v612_v59 }
 0x205   : > { %v621_v3 = vld [vmem:[#allocation15] sm:$0x1] (!%p606_p10)  ;;  %v624_v7 = vld [vmem:[#allocation16] sm:$0x1] (!%p606_p10) }
 0x206   : > { %v614_v62 = vmul.f32 (!%p606_p10), %v611_v60, %v611_v60  ;;  %v618_v4 = vadd.f32 (!%p606_p10), %v617_v2, %v611_v60 }
 0x208   : > { %v615_v63 = vsub.f32 (!%p606_p10), %v613_v61, %v614_v62 }
 0x20a   : > { %v616_v0 = vmax.f32 (!%p606_p10), %v615_v63, 0.0 }
 0x20c   : > { %v619_v1 = vadd.f32 1e-05, %v616_v0 }
 0x20e   : > { %1053 = vrsqrt.f32 %v619_v1 }
 0x218   : > { %v1054_v5 = vpop.eup %1053 }
 0x219   : > { %v622_v6 = vmul.f32 %v1054_v5, %v621_v3 }
 0x21b   : > { %623 = vst [vmem:[#allocation5] sm:$0x1] %v622_v6  ;;  %v625_v9 = vmul.f32 %v622_v6, %v618_v4 }
 0x21d   : > { %v626_v10 = vsub.f32 %v624_v7, %v625_v9 }
 0x21f   : > { %627 = vst [vmem:[#allocation6] sm:$0x1] %v626_v10 }
 0x220 PF: > { %s1906_s0 = sld [smem:[#allocation28_spill]] }
 0x226   : > { %p864_p7 = scmp.ne.s32.totalorder %s1906_s0, 1 }
 0x227   : > { %v865_v11 = vld [vmem:[#allocation5] ss:$0 sm:$0xff] (!%p864_p7)  ;;  %v866_v12 = vld [vmem:[#allocation6] ss:$0 sm:$0xff] (!%p864_p7) }
 0x228   : > { %630 = sbr.rel (%p864_p7) target bundleno = 560 (0x230), region = 84  ;;  %v638_v14 = vmul.f32 (!%p864_p7), %v865_v11, %v1750_v8  ;;  %v639_v15 = vmul.f32 (!%p864_p7), %v865_v11, %v1752_v13 }
 0x22a   : > { %v647_v16 = vadd.f32 (!%p864_p7), %v866_v12, %v638_v14  ;;  %v648_v17 = vadd.f32 (!%p864_p7), %v866_v12, %v639_v15 }
 0x22c   : > { %vm649_vm4 = vcmp.ge.f32.partialorder (!%p864_p7), %v647_v16, 0.0  ;;  %v651_v18 = vmul.f32 (!%p864_p7), 0.1, %v647_v16  ;;  %vm650_vm5 = vcmp.ge.f32.partialorder (!%p864_p7), %v648_v17, 0.0  ;;  %v652_v19 = vmul.f32 (!%p864_p7), 0.1, %v648_v17 }
 0x22e   : > { %v653_v20 = vsel (!%p864_p7), %vm649_vm4, %v647_v16, %v651_v18  ;;  %v654_v21 = vsel (!%p864_p7), %vm650_vm5, %v648_v17, %v652_v19 }
 0x22f   : > { %655 = vst [vmem:[%s1754_s8] sm:$0xff] %v653_v20  ;;  %656 = vst [vmem:[%s1754_s8 + $0x8] sm:$0xff] %v654_v21 }
 0x230 PF: > { %s1907_s17 = sld [smem:[#allocation28_spill]]  ;;  %s1908_s11 = sld [smem:[#allocation27_spill]] }
 0x231   : > { %s1910_s4 = sld [smem:[#allocation29_spill]]  ;;  %s673_s6 = sshll.u32 %s1754_s8, 4  ;;  %s1773_s6 = int_to_ptr.vmem [resolvable:$true] %s673_s6 }
 0x232   : > { %s1911_s24 = sld [smem:[#allocation35_spill]]  ;;  %s1782_s2 = scalar_lea.sflag [#allocation9], %s412_s22 }
 0x233   : > { %s1227_s3 = scalar_lea.vmem %s1773_s6, 256  ;;  %s1379_s8 = smov [#allocation18]  }
 0x234   : > { %p1228_p4 = scmp.ne.s32.totalorder %s1773_s6, %s1227_s3  ;;  %s1231_s12 = sshll.u32 %s1379_s8, 4  ;;  %s1232_s12 = int_to_ptr.vmem [resolvable:$false] %s1231_s12 }
 0x235   : > { %s1233_s20 = scalar_lea.vmem %s1232_s12, 512  ;;  %p1234_p0 = scmp.lt.s32.totalorder %s1773_s6, %s1232_s12 }
 0x236   : > { %s665_s21 = smul.u32 %s1908_s11, %s1907_s17  ;;  %p1235_p5 = scmp.lt.s32.totalorder %s1233_s20, %s1227_s3 }
 0x237   : > { %p1913_p3 = scmp.ne.s32.totalorder %s1910_s4, 0 }
 0x238   : > { %s874_s13 = sshll.u32 %s665_s21, 8  ;;  %s1912_s19 = smov %s1911_s24 }
 0x239   : > { %s1778_s18 = scalar_lea.hbm %s1911_s24, %s874_s13  ;;  %p1229_p13 = pnand %p1228_p4, %p1913_p3 }
 0x23a   : > { %p1236_p8 = por %p1235_p5, %p1234_p0 }
 0x23b   : > { %p1230_p11 = pneg %p1229_p13 }
 0x23d   : > { %p1237_p12 = pnand %p1236_p8, %p1230_p11 }
 0x23f   : > { %1240 = shalt.err (!%p1237_p12)
}
 0x240   : > { %s1241_s22 = scalar_lea.hbm %s1778_s18, 256  ;;  %s1245_s11 = scalar_lea.hbm %s1912_s19, 1024 }
 0x241   : > { %p1242_p2 = scmp.ne.s32.totalorder %s1778_s18, %s1241_s22  ;;  %p1246_p6 = scmp.lt.u32.totalorder %s1778_s18, %s1912_s19 }
 0x242   : > { %p1247_p10 = scmp.lt.u32.totalorder %s1245_s11, %s1241_s22  ;;  %p1249_p4 = scmp.lt.u32.totalorder %s1241_s22, %s1778_s18 }
 0x243   : > { %p1243_p9 = pnand %p1242_p2, %p1913_p3 }
 0x244   : > { %p1248_p7 = por %p1247_p10, %p1246_p6 }
 0x245   : > { %p1244_p1 = pneg %p1243_p9 }
 0x246   : > { %p1250_p13 = por %p1249_p4, %p1248_p7 }
 0x248   : > { %p1251_p11 = pnand %p1250_p13, %p1244_p1 }
 0x24a   : > { %1254 = shalt.err (!%p1251_p11)
}
 0x24b   : > { %s1380_s13 = smov 128   ;;  %s1381_s10 = smov 8  }
 0x24c   : > { %913 = dma.vmem_to_hbm [thread:$0]  (%p1913_p3), %s1773_s6, 256, %s1778_s18, %s1782_s2, %s1380_s13, %s1380_s13, %s1381_s10  }
 0x24d PF: > { %s1914_s28 = sld [smem:[#allocation25_spill]]  ;;  %s1915_s24 = sld [smem:[#allocation30_spill]] }
 0x24e   : > { %p948_p0 = scmp.ge.s32.totalorder %s1365_s7, 2 }
 0x253   : > { %s688_s3 = sand.u32 1, %s1914_s28   ;;  %p1916_p5 = scmp.ne.s32.totalorder %s1915_s24, 0 }
 0x254   : > { %s689_s8 = scalar_lea.sflag [#allocation9], %s688_s3 }
 0x255   : > { %p936_p8 = pnand %p948_p0, %p1916_p5 }
 0x257   : > { %1320 = dma.done.wait (!%p936_p8), %s689_s8, 256  }
 0x258   : > { %1322 = vsyncadd (!%p936_p8), %s689_s8, 4294967040  ;;  %s27_s7 = sadd.s32 1, %s1365_s7   ;;  %s1917_s21 = sld [smem:[#allocation26_spill]] }
 0x259   : > { %p24_p12 = scmp.ge.s32.totalorder %s27_s7, 10   ;;  %s1918_s22 = smov %s1333_s23 }
 0x25a   : > { %s1919_s23 = smov %s1629_s27  ;;  %s1920_s24 = smov %s1341_s25 }
 0x25b   : > { %s1921_s25 = smov %s1345_s26  ;;  %s1922_s26 = smov %s1620_s9 }
 0x25c   : > { %s1923_s27 = smov %s1357_s29  ;;  %s1924_s28 = smov %s1361_s30 }
 0x25d   : > { %s1925_s29 = smov %s1928_s14  ;;  %s1926_s30 = smov %s1932_s16 }
 0x25e   :  { %26 = sbr.rel (!%p24_p12) target bundleno = 19 (0x13), region = 138 }
 0x265   :  { %694 = vsyncpa [#allocation8], 1 }
 0x266   :  { %696 = vsyncpa [#allocation8 + $0x1], 1 }
 0x267   :  { %697 = vsyncpa [#allocation11], 1 }
 0x268   :  { %699 = vsyncpa [#allocation11 + $0x1], 1 }
 0x269   :  { %700 = vsyncpa [#allocation14], 1 }
 0x26a   :  { %701 = vsyncpa [#allocation17], 1 }
 0x26b   :  { %702 = vsyncpa [#allocation9], 1 }
 0x26c   :  { %704 = vsyncpa [#allocation9 + $0x1], 1 }

</bundles_post_ra>
